<compile_context>
chip_gen: v5e
topology: v5e:2x2
jax: 0.10.0
libtpu: 0.0.40
codegen_flags: <defaults>
</compile_context>

<pallas_src>
import functools

import jax
import jax.numpy as jnp
from jax import lax
from jax.experimental import pallas as pl
from jax.experimental.pallas import tpu as pltpu

LANES = 128
SUBLANES = 8
MAX_TILE_ROWS = 4096                 # (4096, 128) f32 == 2 MiB per input tile
LOG_CLAMP = -100.0                   # torch.nn.BCELoss clamps log terms at -100
VMEM_LIMIT_BYTES = 48 * 1024 * 1024  # > 2 inputs x 2 buffers x tile + headroom


def _round_up(x, m):
    return (x + m - 1) // m * m


def _min_tile_rows(*dtypes):
    # Sub-32-bit dtypes pack along sublanes: minimum second-minor tile is
    # 8 rows (f32), 16 (bf16/f16), 32 (int8/fp8).
    m = SUBLANES
    for dt in dtypes:
        packing = max(1, 4 // jnp.dtype(dt).itemsize)
        m = max(m, SUBLANES * packing)
    return m


def _num_tensorcores():
    # v7x exposes two TensorCores per chip; v5e/v6e have one.
    try:
        kind = jax.devices()[0].device_kind.lower()
    except Exception:
        return 1
    return 2 if "7" in kind else 1


def _bce_dice_kernel(o_ref, t_ref, out_ref, acc_ref, *, tile_rows, num_blocks,
                     rem_rows, steps_per_core, has_overrun):
    # acc_ref: (3, 8, 128) f32 per-lane partials
    #   [0] sum(o*t)   [1] sum(o + t)   [2] sum of un-negated elementwise BCE
    c = pl.program_id(0)              # core axis (size 1 on v5e/v6e)
    i = pl.program_id(1)              # sequential reduction axis
    block = c * steps_per_core + i    # logical (unclamped) block index

    @pl.when(i == 0)
    def _():
        acc_ref[...] = jnp.zeros_like(acc_ref)

    o = o_ref[...].astype(jnp.float32)
    t = t_ref[...].astype(jnp.float32)
    groups = tile_rows // SUBLANES

    def accumulate(o, t):
        inter = o * t
        denom = o + t
        log_o = jnp.maximum(jnp.log(o), LOG_CLAMP)
        log_1mo = jnp.maximum(jnp.log1p(-o), LOG_CLAMP)
        # Un-negated BCE, rewritten to save VPU ops; negated once in wrapper.
        bce_neg = t * (log_o - log_1mo) + log_1mo
        # Fold tile sublane-groups into (8, 128) partials — pure VPU adds; the
        # single cross-lane/sublane reduction is deferred to the wrapper.
        acc_ref[0] += inter.reshape(groups, SUBLANES, LANES).sum(axis=0)
        acc_ref[1] += denom.reshape(groups, SUBLANES, LANES).sum(axis=0)
        acc_ref[2] += bce_neg.reshape(groups, SUBLANES, LANES).sum(axis=0)

    def masked_accumulate():
        # Ragged last block: zero the out-of-bounds rows (zeros contribute 0
        # to all three sums, incl. BCE after the -100 clamp).  Row-granular
        # compare only — no 32-bit element linearization that could overflow.
        ridx = lax.broadcasted_iota(jnp.int32, (tile_rows, LANES), 0)
        m = ridx < rem_rows
        accumulate(jnp.where(m, o, 0.0), jnp.where(m, t, 0.0))

    if rem_rows == 0 and not has_overrun:
        # Steady-state hot path: no masks, no gating.
        accumulate(o, t)
    elif rem_rows == 0:
        @pl.when(block < num_blocks)
        def _():
            accumulate(o, t)
    else:
        @pl.when(block < num_blocks - 1)
        def _():
            accumulate(o, t)

        @pl.when(block == num_blocks - 1)
        def _():
            masked_accumulate()

    @pl.when(i == pl.num_programs(1) - 1)
    def _():
        out_ref[0] = acc_ref[...]


def _partial_sums(o2d, t2d, rows, num_cores):
    """Run the streaming kernel over a (rows, 128) view; returns
    (num_cores, 3, 8, 128) f32 per-lane partial sums."""
    min_rows = _min_tile_rows(o2d.dtype, t2d.dtype)
    tile_rows = min(MAX_TILE_ROWS, _round_up(rows, min_rows))
    num_blocks = pl.cdiv(rows, tile_rows)
    steps_per_core = pl.cdiv(num_blocks, num_cores)
    has_overrun = num_cores * steps_per_core > num_blocks
    rem_rows = rows % tile_rows        # 0 means every block is full

    if num_cores > 1:
        def in_map(c, i):
            # Clamp so overrun iterations never DMA past the array; the kernel
            # skips their contribution via the unclamped block index.
            return (jnp.minimum(c * steps_per_core + i, num_blocks - 1), 0)
        dim_sem = (pltpu.CORE_PARALLEL, pltpu.ARBITRARY)
    else:
        def in_map(c, i):
            return (i, 0)
        dim_sem = ("arbitrary", "arbitrary")

    n = rows * LANES
    bytes_per_el = o2d.dtype.itemsize + t2d.dtype.itemsize
    cost = pl.CostEstimate(flops=10 * n, transcendentals=2 * n,
                           bytes_accessed=n * bytes_per_el)

    kernel = functools.partial(
        _bce_dice_kernel, tile_rows=tile_rows, num_blocks=num_blocks,
        rem_rows=rem_rows, steps_per_core=steps_per_core,
        has_overrun=has_overrun)

    return pl.pallas_call(
        kernel,
        out_shape=jax.ShapeDtypeStruct((num_cores, 3, SUBLANES, LANES),
                                       jnp.float32),
        grid_spec=pltpu.PrefetchScalarGridSpec(
            num_scalar_prefetch=0,
            grid=(num_cores, steps_per_core),
            in_specs=[
                pl.BlockSpec((tile_rows, LANES), in_map),
                pl.BlockSpec((tile_rows, LANES), in_map),
            ],
            out_specs=pl.BlockSpec((1, 3, SUBLANES, LANES),
                                   lambda c, i: (c, 0, 0, 0)),
            scratch_shapes=[pltpu.VMEM((3, SUBLANES, LANES), jnp.float32)],
        ),
        compiler_params=pltpu.CompilerParams(
            dimension_semantics=dim_sem,
            vmem_limit_bytes=VMEM_LIMIT_BYTES,
        ),
        cost_estimate=cost,
    )(o2d, t2d)


def _elementwise_sums_jnp(o, t):
    # Plain-JAX fold for the <128-element ragged tail (same math as kernel).
    o = o.astype(jnp.float32)
    t = t.astype(jnp.float32)
    log_o = jnp.maximum(jnp.log(o), LOG_CLAMP)
    log_1mo = jnp.maximum(jnp.log1p(-o), LOG_CLAMP)
    bce_neg = t * (log_o - log_1mo) + log_1mo
    return jnp.sum(o * t), jnp.sum(o + t), jnp.sum(bce_neg)


def bce_dice_loss(outputs, targets, smooth=1e-6, dice_weight=0.33):
    assert outputs.shape == targets.shape
    n = int(outputs.size)
    assert n > 0

    o_flat = jnp.ravel(outputs)            # native dtype; cast happens in-kernel
    t_flat = jnp.ravel(targets)

    rows = n // LANES
    aligned = rows * LANES

    inter_s = jnp.float32(0.0)
    denom_s = jnp.float32(0.0)
    bceneg_s = jnp.float32(0.0)

    if rows > 0:
        # 128-aligned prefix through the kernel (no full-array pad copy).
        o2d = o_flat[:aligned].reshape(rows, LANES)
        t2d = t_flat[:aligned].reshape(rows, LANES)

        num_cores = _num_tensorcores()
        if num_cores > 1:
            try:
                partials = _partial_sums(o2d, t2d, rows, num_cores)
            except Exception:
                # TODO(synk): verify CORE_PARALLEL two-TensorCore sharding on
                # v7x; fall back to a single sequential grid if unsupported.
                partials = _partial_sums(o2d, t2d, rows, 1)
        else:
            partials = _partial_sums(o2d, t2d, rows, 1)

        sums = jnp.sum(partials, axis=(0, 2, 3))   # (3,) final tree reduce
        inter_s, denom_s, bceneg_s = sums[0], sums[1], sums[2]

    if aligned != n:
        # <128-element tail folded in plain JAX.
        ti, td, tb = _elementwise_sums_jnp(o_flat[aligned:], t_flat[aligned:])
        inter_s = inter_s + ti
        denom_s = denom_s + td
        bceneg_s = bceneg_s + tb

    bce_loss = -bceneg_s / n
    dice_coeff = (2.0 * inter_s + smooth) / (denom_s + smooth)
    dice_loss = 1.0 - dice_coeff
    return bce_loss + dice_weight * dice_loss


def bce_dice_loss_ref(outputs, targets, smooth=1e-6, dice_weight=0.33):
    o = jnp.ravel(outputs).astype(jnp.float32)
    t = jnp.ravel(targets).astype(jnp.float32)
    bce = jnp.mean(-(t * jnp.log(o) + (1.0 - t) * jnp.log1p(-o)))
    inter = jnp.sum(o * t)
    dice = (2.0 * inter + smooth) / (jnp.sum(o) + jnp.sum(t) + smooth)
    return bce + dice_weight * (1.0 - dice)


if __name__ == "__main__":
    key = jax.random.PRNGKey(0)
    k1, k2 = jax.random.split(key)
    # NCHW: sigmoid outputs of a segmentation net and binary float targets.
    x_shape = (2, 4, 16, 16)
    outputs = jax.nn.sigmoid(jax.random.normal(k1, x_shape, dtype=jnp.float32))
    targets = (jax.random.uniform(k2, x_shape) > 0.5).astype(jnp.float32)

    loss = jax.block_until_ready(bce_dice_loss(outputs, targets))
    ref = jax.block_until_ready(bce_dice_loss_ref(outputs, targets))

    assert jnp.allclose(loss, ref, atol=1e-5, rtol=1e-5), (loss, ref)
    print("KERNEL_OK")
</pallas_src>

<mosaic_0001>
module attributes {stable_mosaic.version = 11 : i64} {
  func.func @_bce_dice_kernel(%arg0: i32, %arg1: i32, %arg2: memref<16x128xf32, #tpu.memory_space<vmem>>, %arg3: memref<16x128xf32, #tpu.memory_space<vmem>>, %arg4: memref<1x3x8x128xf32, #tpu.memory_space<vmem>>, %arg5: memref<3x8x128xf32, #tpu.memory_space<vmem>>) attributes {dimension_semantics = [#tpu.dimension_semantics<arbitrary>, #tpu.dimension_semantics<arbitrary>], iteration_bounds = array<i64: 1, 1>, scalar_prefetch = 0 : i64, scratch_operands = 1 : i64, tpu.core_type = #tpu.core_type<tc>, window_params = [{transform_indices = @transform_0, window_bounds = array<i64: 16, 128>}, {transform_indices = @transform_1, window_bounds = array<i64: 16, 128>}, {transform_indices = @transform_2, window_bounds = array<i64: 1, 3, 8, 128>}]} {
    %c0_i32 = arith.constant 0 : i32
    %0 = arith.cmpi eq, %arg1, %c0_i32 : i32
    %1 = arith.extui %0 : i1 to i32
    %c0_i32_0 = arith.constant 0 : i32
    %2 = arith.cmpi ne, %1, %c0_i32_0 : i32
    scf.if %2 {
      %cst_27 = arith.constant 0.000000e+00 : f32
      %45 = vector.broadcast %cst_27 : f32 to vector<3x8x128xf32>
      %c0_28 = arith.constant 0 : index
      %c0_29 = arith.constant 0 : index
      %c0_30 = arith.constant 0 : index
      %46 = vector.load %arg5[%c0_28, %c0_29, %c0_30] : memref<3x8x128xf32, #tpu.memory_space<vmem>>, vector<3x8x128xf32>
      tpu.vector_store %arg5[%c0_28, %c0_29, %c0_30], %45 {strides = array<i32>} : memref<3x8x128xf32, #tpu.memory_space<vmem>>, vector<3x8x128xf32>,
    } else {
    }
    %c0 = arith.constant 0 : index
    %c0_1 = arith.constant 0 : index
    %3 = vector.load %arg2[%c0, %c0_1] : memref<16x128xf32, #tpu.memory_space<vmem>>, vector<16x128xf32>
    %c0_2 = arith.constant 0 : index
    %c0_3 = arith.constant 0 : index
    %4 = vector.load %arg3[%c0_2, %c0_3] : memref<16x128xf32, #tpu.memory_space<vmem>>, vector<16x128xf32>
    %5 = arith.mulf %3, %4 : vector<16x128xf32>
    %6 = arith.addf %3, %4 : vector<16x128xf32>
    %7 = math.log %3 : vector<16x128xf32>
    %cst = arith.constant -1.000000e+02 : f32
    %8 = vector.broadcast %cst : f32 to vector<16x128xf32>
    %9 = arith.maximumf %7, %8 : vector<16x128xf32>
    %cst_4 = arith.constant 0.000000e+00 : f32
    %10 = vector.broadcast %cst_4 : f32 to vector<16x128xf32>
    %11 = arith.subf %10, %3 : vector<16x128xf32>
    %12 = math.log1p %11 : vector<16x128xf32>
    %cst_5 = arith.constant -1.000000e+02 : f32
    %13 = vector.broadcast %cst_5 : f32 to vector<16x128xf32>
    %14 = arith.maximumf %12, %13 : vector<16x128xf32>
    %15 = arith.subf %9, %14 : vector<16x128xf32>
    %16 = arith.mulf %4, %15 : vector<16x128xf32>
    %17 = arith.addf %16, %14 : vector<16x128xf32>
    %c0_6 = arith.constant 0 : index
    %c0_7 = arith.constant 0 : index
    %c0_8 = arith.constant 0 : index
    %18 = vector.load %arg5[%c0_6, %c0_7, %c0_8] : memref<3x8x128xf32, #tpu.memory_space<vmem>>, vector<1x8x128xf32>
    %19 = vector.shape_cast %18 : vector<1x8x128xf32> to vector<8x128xf32>
    %20 = vector.shape_cast %5 : vector<16x128xf32> to vector<2x8x128xf32>
    %cst_9 = arith.constant dense<0.000000e+00> : vector<8x128xf32>
    %21 = vector.multi_reduction <add>, %20, %cst_9 [0] : vector<2x8x128xf32> to vector<8x128xf32>
    %22 = arith.addf %19, %21 : vector<8x128xf32>
    %c0_10 = arith.constant 0 : index
    %c0_11 = arith.constant 0 : index
    %c0_12 = arith.constant 0 : index
    %23 = vector.load %arg5[%c0_10, %c0_11, %c0_12] : memref<3x8x128xf32, #tpu.memory_space<vmem>>, vector<1x8x128xf32>
    %24 = vector.shape_cast %23 : vector<1x8x128xf32> to vector<8x128xf32>
    %25 = vector.shape_cast %22 : vector<8x128xf32> to vector<1x8x128xf32>
    tpu.vector_store %arg5[%c0_10, %c0_11, %c0_12], %25 {strides = array<i32>} : memref<3x8x128xf32, #tpu.memory_space<vmem>>, vector<1x8x128xf32>,
    %c1 = arith.constant 1 : index
    %c0_13 = arith.constant 0 : index
    %c0_14 = arith.constant 0 : index
    %26 = vector.load %arg5[%c1, %c0_13, %c0_14] : memref<3x8x128xf32, #tpu.memory_space<vmem>>, vector<1x8x128xf32>
    %27 = vector.shape_cast %26 : vector<1x8x128xf32> to vector<8x128xf32>
    %28 = vector.shape_cast %6 : vector<16x128xf32> to vector<2x8x128xf32>
    %cst_15 = arith.constant dense<0.000000e+00> : vector<8x128xf32>
    %29 = vector.multi_reduction <add>, %28, %cst_15 [0] : vector<2x8x128xf32> to vector<8x128xf32>
    %30 = arith.addf %27, %29 : vector<8x128xf32>
    %c1_16 = arith.constant 1 : index
    %c0_17 = arith.constant 0 : index
    %c0_18 = arith.constant 0 : index
    %31 = vector.load %arg5[%c1_16, %c0_17, %c0_18] : memref<3x8x128xf32, #tpu.memory_space<vmem>>, vector<1x8x128xf32>
    %32 = vector.shape_cast %31 : vector<1x8x128xf32> to vector<8x128xf32>
    %33 = vector.shape_cast %30 : vector<8x128xf32> to vector<1x8x128xf32>
    tpu.vector_store %arg5[%c1_16, %c0_17, %c0_18], %33 {strides = array<i32>} : memref<3x8x128xf32, #tpu.memory_space<vmem>>, vector<1x8x128xf32>,
    %c2 = arith.constant 2 : index
    %c0_19 = arith.constant 0 : index
    %c0_20 = arith.constant 0 : index
    %34 = vector.load %arg5[%c2, %c0_19, %c0_20] : memref<3x8x128xf32, #tpu.memory_space<vmem>>, vector<1x8x128xf32>
    %35 = vector.shape_cast %34 : vector<1x8x128xf32> to vector<8x128xf32>
    %36 = vector.shape_cast %17 : vector<16x128xf32> to vector<2x8x128xf32>
    %cst_21 = arith.constant dense<0.000000e+00> : vector<8x128xf32>
    %37 = vector.multi_reduction <add>, %36, %cst_21 [0] : vector<2x8x128xf32> to vector<8x128xf32>
    %38 = arith.addf %35, %37 : vector<8x128xf32>
    %c2_22 = arith.constant 2 : index
    %c0_23 = arith.constant 0 : index
    %c0_24 = arith.constant 0 : index
    %39 = vector.load %arg5[%c2_22, %c0_23, %c0_24] : memref<3x8x128xf32, #tpu.memory_space<vmem>>, vector<1x8x128xf32>
    %40 = vector.shape_cast %39 : vector<1x8x128xf32> to vector<8x128xf32>
    %41 = vector.shape_cast %38 : vector<8x128xf32> to vector<1x8x128xf32>
    tpu.vector_store %arg5[%c2_22, %c0_23, %c0_24], %41 {strides = array<i32>} : memref<3x8x128xf32, #tpu.memory_space<vmem>>, vector<1x8x128xf32>,
    %c0_i32_25 = arith.constant 0 : i32
    %42 = arith.cmpi eq, %arg1, %c0_i32_25 : i32
    %43 = arith.extui %42 : i1 to i32
    %c0_i32_26 = arith.constant 0 : i32
    %44 = arith.cmpi ne, %43, %c0_i32_26 : i32
    scf.if %44 {
      %c0_27 = arith.constant 0 : index
      %c0_28 = arith.constant 0 : index
      %c0_29 = arith.constant 0 : index
      %45 = vector.load %arg5[%c0_27, %c0_28, %c0_29] : memref<3x8x128xf32, #tpu.memory_space<vmem>>, vector<3x8x128xf32>
      %c0_30 = arith.constant 0 : index
      %c0_31 = arith.constant 0 : index
      %c0_32 = arith.constant 0 : index
      %c0_33 = arith.constant 0 : index
      %46 = vector.load %arg4[%c0_30, %c0_31, %c0_32, %c0_33] : memref<1x3x8x128xf32, #tpu.memory_space<vmem>>, vector<1x3x8x128xf32>
      %47 = vector.shape_cast %46 : vector<1x3x8x128xf32> to vector<3x8x128xf32>
      %48 = vector.shape_cast %45 : vector<3x8x128xf32> to vector<1x3x8x128xf32>
      tpu.vector_store %arg4[%c0_30, %c0_31, %c0_32, %c0_33], %48 {strides = array<i32>} : memref<1x3x8x128xf32, #tpu.memory_space<vmem>>, vector<1x3x8x128xf32>,
    } else {
    }
    return
  }
  func.func @transform_0(%arg0: i32, %arg1: i32) -> (i32, i32) {
    %c0_i32 = arith.constant 0 : i32
    %c0_i32_0 = arith.constant 0 : i32
    return %arg1, %c0_i32 : i32, i32
  }
  func.func @transform_1(%arg0: i32, %arg1: i32) -> (i32, i32) {
    %c0_i32 = arith.constant 0 : i32
    %c0_i32_0 = arith.constant 0 : i32
    return %arg1, %c0_i32 : i32, i32
  }
  func.func @transform_2(%arg0: i32, %arg1: i32) -> (i32, i32, i32, i32) {
    %c0_i32 = arith.constant 0 : i32
    %c0_i32_0 = arith.constant 0 : i32
    %c0_i32_1 = arith.constant 0 : i32
    %c0_i32_2 = arith.constant 0 : i32
    return %arg0, %c0_i32, %c0_i32_0, %c0_i32_1 : i32, i32, i32, i32
  }
}

</mosaic_0001>

<bundles_post_ra>
// kernel: tpu_custom_call.1
= control target key start
LH: loop header
LB: loop body
LE: loop exit
PB: predicated region body
PF: predicated region fallthrough
CT: control target
= control target key end

     0   :  { %7 = vsyncpa [#allocation4], 0  ;;  %s265_s0 = inlined_call_operand.hbm [shape: f32[16,128], index: 0, kind: input, shape index: {}]   ;;  %s266_s1 = inlined_call_operand.hbm [shape: f32[16,128], index: 1, kind: input, shape index: {}]   ;;  %s267_s2 = inlined_call_operand.hbm [shape: f32[1,3,8,128], index: 2, kind: output, shape index: {}]  }
   0x1   :  { %8 = vsyncpa [#allocation7], 0 }
   0x2   :  { %9 = vsyncpa [#allocation5], 0  ;;  %s14_s11 = sshll.u32 %s265_s0, 4  ;;  %s227_s12 = smov [#allocation3]   ;;  %s15_s11 = int_to_ptr.hbm [resolvable:$true] %s14_s11 }
   0x3   :  { %s16_s13 = sshll.u32 %s227_s12, 4  ;;  %s27_s16 = sshll.u32 %s266_s1, 4  ;;  %s17_s13 = int_to_ptr.vmem [resolvable:$true] %s16_s13  ;;  %s28_s16 = int_to_ptr.hbm [resolvable:$true] %s27_s16 }
   0x4   :  { %s228_s17 = smov 128   ;;  %s229_s18 = smov 8  }
   0x5   :  { %22 = dma.hbm_to_vmem [thread:$0]  %s15_s11, 256, %s17_s13, [#allocation4], %s228_s17, %s228_s17, %s229_s18  }
   0x6   :  { %s230_s19 = smov [#allocation6]  }
   0x7   :  { %s29_s20 = sshll.u32 %s230_s19, 4  ;;  %s30_s20 = int_to_ptr.vmem [resolvable:$true] %s29_s20 }
   0x8   :  { %35 = dma.hbm_to_vmem [thread:$0]  %s28_s16, 256, %s30_s20, [#allocation7], %s228_s17, %s228_s17, %s229_s18  }
   0x9   :  { %221 = dma.done.wait [#allocation4], 256  }
   0xa   :  { %222 = vsyncadd [#allocation4], 4294967040 }
   0xb   :  { %223 = dma.done.wait [#allocation7], 256  }
   0xc   :  { %224 = vsyncadd [#allocation7], 4294967040  ;;  %v51_v0 = vld [vmem:[#allocation3] sm:$0xff]  ;;  %v52_v1 = vld [vmem:[#allocation3 + $0x8] sm:$0xff]  ;;  %s231_s0 = smov [#allocation8]   ;;  %s122_s23 = sshll.u32 %s267_s2, 4  ;;  %s123_s23 = int_to_ptr.hbm [resolvable:$true] %s122_s23 }
   0xd   :  { %v53_v2 = vld [vmem:[#allocation6] sm:$0xff]  ;;  %v54_v3 = vld [vmem:[#allocation6 + $0x8] sm:$0xff]  ;;  %141 = vlog2.f32 %v51_v0  ;;  %v65_v5 = vsub.f32 0.0, %v51_v0  ;;  %v66_v6 = vsub.f32 0.0, %v52_v1  ;;  %s120_s1 = sshll.u32 %s231_s0, 4  ;;  %s121_s1 = int_to_ptr.vmem [resolvable:$true] %s120_s1 }
   0xe   :  { %v55_v4 = vmul.f32 %v53_v2, %v51_v0  ;;  %v56_v7 = vmul.f32 %v54_v3, %v52_v1  ;;  %143 = vlog2.f32 %v52_v1  ;;  %v57_v8 = vadd.f32 %v53_v2, %v51_v0 }
   0xf   :  { %v58_v9 = vadd.f32 %v54_v3, %v52_v1  ;;  %v67_v10 = vadd.f32 1.0, %v65_v5  ;;  %v70_v11 = vmul.f32 -0.5, %v65_v5  ;;  %v76_v12 = vadd.f32 1.0, %v66_v6 }
  0x10   :  { %v94_v13 = vadd.f32 %v56_v7, %v55_v4  ;;  %v79_v15 = vmul.f32 -0.5, %v66_v6  ;;  %v73_v18 = vand.u32 2147483647, %v65_v5  ;;  %v82_v21 = vand.u32 2147483647, %v66_v6 }
  0x11   :  { %v99_v14 = vadd.f32 %v58_v9, %v57_v8  ;;  %145 = vlog2.f32 %v67_v10  ;;  %v71_v16 = vadd.f32 1.0, %v70_v11 }
  0x12   :  { %113 = vst [vmem:[#allocation8] sm:$0xff] %v94_v13  ;;  %147 = vlog2.f32 %v76_v12  ;;  %v80_v19 = vadd.f32 1.0, %v79_v15  ;;  %vm74_vm0 = vcmp.lt.f32.partialorder %v73_v18, 0.0004427343  ;;  %vm83_vm1 = vcmp.lt.f32.partialorder %v82_v21, 0.0004427343 }
  0x13   :  { %v142_v17 = vpop.eup %141  ;;  %114 = vst [vmem:[#allocation8 + $0x8] sm:$0xff] %v99_v14  ;;  %v72_v24 = vmul.f32 %v71_v16, %v65_v5 }
  0x14   :  { %v144_v20 = vpop.eup %143  ;;  %v60_v22 = vmul.f32 0.6931472, %v142_v17  ;;  %v81_v26 = vmul.f32 %v80_v19, %v66_v6 }
  0x15   :  { %v62_v23 = vmul.f32 0.6931472, %v144_v20 }
  0x16   :  { %v63_v29 = vmax.f32 %v60_v22, -100.0 }
  0x17   :  { %v146_v25 = vpop.eup %145  ;;  %v64_v31 = vmax.f32 %v62_v23, -100.0 }
  0x18   :  { %v148_v27 = vpop.eup %147  ;;  %v69_v28 = vmul.f32 0.6931472, %v146_v25 }
  0x19   :  { %v78_v30 = vmul.f32 0.6931472, %v148_v27 }
  0x1a   :  { %v75_v32 = vsel %vm74_vm0, %v72_v24, %v69_v28 }
  0x1b   :  { %v84_v33 = vsel %vm83_vm1, %v81_v26, %v78_v30  ;;  %v85_v34 = vmax.f32 %v75_v32, -100.0 }
  0x1c   :  { %v86_v35 = vmax.f32 %v84_v33, -100.0 }
  0x1d   :  { %v87_v36 = vsub.f32 %v63_v29, %v85_v34 }
  0x1e   :  { %v88_v37 = vsub.f32 %v64_v31, %v86_v35 }
  0x1f   :  { %v89_v38 = vmul.f32 %v87_v36, %v53_v2 }
  0x20   :  { %v90_v39 = vmul.f32 %v88_v37, %v54_v3 }
  0x21   :  { %v91_v40 = vadd.f32 %v89_v38, %v85_v34 }
  0x22   :  { %v92_v41 = vadd.f32 %v90_v39, %v86_v35 }
  0x24   :  { %v104_v42 = vadd.f32 %v92_v41, %v91_v40 }
  0x26   :  { %115 = vst [vmem:[#allocation8 + $0x10] sm:$0xff] %v104_v42 }
  0x27   :  { %128 = dma.vmem_to_hbm [thread:$0]  %s121_s1, 384, %s123_s23, [#allocation5], %s228_s17, %s228_s17, %s229_s18  }
  0x28   :  { %225 = dma.done.wait [#allocation5], 384  }
  0x29   :  { %226 = vsyncadd [#allocation5], 4294966912 }
  0x2a   :  { %133 = vsyncpa [#allocation4], 1 }
  0x2b   :  { %134 = vsyncpa [#allocation7], 1 }
  0x2c   :  { %135 = vsyncpa [#allocation5], 1 }

</bundles_post_ra>
